<compile_context>
chip_gen: v5e
topology: v5e:2x2
jax: 0.10.0
libtpu: 0.0.40
codegen_flags: <defaults>
</compile_context>

<pallas_src>
import functools

import numpy as np
import jax
import jax.numpy as jnp
from jax.experimental import pallas as pl
from jax.experimental.pallas import tpu as pltpu


# ----------------------------------------------------------------------------
# tiling choices
# ----------------------------------------------------------------------------
def _choose_tiling(C):
    """Pick (ct, gf): ct channels folded into lanes, gf channel-subgroups
    folded into rows (alongside batch)."""
    ct = next(t for t in (8, 16, 4, 2, 1) if C % t == 0)
    gf = 2 if C % (2 * ct) == 0 else 1
    return ct, gf


def _padded_freqs(Wf, ct):
    """Pad the rfft frequency axis so ct*F is a multiple of 128 (lane tile)."""
    fr = (128 // ct) if (128 % ct == 0) else 8
    return ((Wf + fr - 1) // fr) * fr


# ----------------------------------------------------------------------------
# constants (cached -- built once per (shape, tiling))
# ----------------------------------------------------------------------------
@functools.lru_cache(maxsize=None)
def _build_constants(H, W, Wf, F, ct, rep):
    """Stacked / block-diagonal ortho-normalized DFT matrices (numpy f32).

    rep = gf * B : number of H-row blocks folded into the sublane dimension.
    """
    f32 = np.float32
    k = np.arange(H, dtype=np.float64)
    theta = 2.0 * np.pi * np.outer(k, k) / H                      # (H, H), symmetric
    Ar = (np.cos(theta) / np.sqrt(H)).astype(f32)                 # forward DFT over H
    Ai = (-np.sin(theta) / np.sqrt(H)).astype(f32)
    Cr = (np.cos(theta) / np.sqrt(H)).astype(f32)                 # inverse DFT over H
    Ci = (np.sin(theta) / np.sqrt(H)).astype(f32)

    w = np.arange(W, dtype=np.float64)
    f = np.arange(Wf, dtype=np.float64)
    phi = 2.0 * np.pi * np.outer(w, f) / W                        # (W, Wf)
    Br = np.zeros((W, F), f32)
    Bi = np.zeros((W, F), f32)
    Br[:, :Wf] = np.cos(phi) / np.sqrt(W)                         # forward rDFT over W
    Bi[:, :Wf] = -np.sin(phi) / np.sqrt(W)

    # inverse rDFT over W with the Hermitian fold baked in:
    #   D[f, n] = coef_f * exp(+2i*pi*f*n/W) / sqrt(W), coef = 1 for DC/Nyquist, 2 else
    coef = np.full((Wf,), 2.0, dtype=np.float64)
    coef[0] = 1.0
    if W % 2 == 0:
        coef[W // 2] = 1.0
    psi = 2.0 * np.pi * np.outer(f, w) / W                        # (Wf, W)
    Dr = np.zeros((F, W), f32)
    Di = np.zeros((F, W), f32)
    Dr[:Wf, :] = coef[:, None] * np.cos(psi) / np.sqrt(W)
    Di[:Wf, :] = coef[:, None] * np.sin(psi) / np.sqrt(W)

    eye_r = np.eye(rep, dtype=f32)
    eye_c = np.eye(ct, dtype=f32)
    # forward DFT over H acting inside each of the `rep` row blocks, real/imag stacked
    AA = np.concatenate([np.kron(eye_r, Ar), np.kron(eye_r, Ai)], axis=0)   # (2*rep*H, rep*H)
    # forward rDFT over W for all ct lane-channels (block diagonal)
    Bblk = np.concatenate([np.kron(eye_c, Br), np.kron(eye_c, Bi)], axis=1)  # (ct*W, 2*ct*F)
    # inverse rDFT over W (Hermitian fold inside D), block diagonal
    Dblk = np.concatenate([np.kron(eye_c, Dr), np.kron(eye_c, Di)], axis=1)  # (ct*F, 2*ct*W)
    # inverse DFT over H: out = Cr@vr - Ci@vi
    CC2 = np.stack([np.kron(eye_r, Cr), np.kron(eye_r, Ci)], axis=0)         # (2, rep*H, rep*H)
    return AA, Bblk, Dblk, CC2


# ----------------------------------------------------------------------------
# one-time weight packing (parameter-load time, NOT per forward call)
# ----------------------------------------------------------------------------
def pack_spectral_weight(weight, batch, *, ct=None, gf=None):
    """Pack the (C, H, Wf, 2) complex weight into the kernel's row-folded,
    lane-dense layout: (Gc, 2, gf*batch*H, ct*F).  Do this ONCE per parameter."""
    C, H, Wf, two = weight.shape
    assert two == 2
    if ct is None or gf is None:
        ct, gf = _choose_tiling(C)
    F = _padded_freqs(Wf, ct)
    Gc = C // (gf * ct)

    w = jnp.asarray(weight, jnp.float32)
    w = jnp.pad(w, ((0, 0), (0, 0), (0, F - Wf), (0, 0)))          # (C, H, F, 2)
    # c = g*gf*ct + gsub*ct + cc ; row = gsub*(B*H) + b*H + h ; lane = cc*F + f
    w = w.reshape(Gc, gf, ct, H, F, 2)
    w = jnp.transpose(w, (0, 5, 1, 3, 2, 4))                       # (Gc, 2, gf, H, ct, F)
    w = jnp.broadcast_to(w[:, :, :, None, :, :, :],
                         (Gc, 2, gf, batch, H, ct, F))             # replicate over batch rows
    return w.reshape(Gc, 2, gf * batch * H, ct * F)


# ----------------------------------------------------------------------------
# kernel
# ----------------------------------------------------------------------------
def _spectral_kernel(x_ref, w_ref, aa_ref, bblk_ref, dblk_ref, cc_ref, o_ref):
    rows = x_ref.shape[0]          # gf * B * H (sublane dim)
    ctw = x_ref.shape[1]           # ct * W     (lane dim, spatial domain)
    ctf = w_ref.shape[2]           # ct * F     (lane dim, frequency domain)

    x = x_ref[...]                                                          # (rows, ctw)

    # forward DFT over H (per row block), real & imag stacked along rows
    u = jnp.dot(aa_ref[...], x, preferred_element_type=jnp.float32)        # (2*rows, ctw)

    # forward rDFT over W for all ct channels at once (block-diagonal [Br|Bi])
    q = jnp.dot(u, bblk_ref[...], preferred_element_type=jnp.float32)      # (2*rows, 2*ctf)
    xr = q[0:rows, 0:ctf] - q[rows:2 * rows, ctf:2 * ctf]                   # (rows, ctf)
    xi = q[0:rows, ctf:2 * ctf] + q[rows:2 * rows, 0:ctf]

    # per-channel complex weight multiply
    wr = w_ref[0]
    wi = w_ref[1]
    yr = xr * wr - xi * wi
    yi = xr * wi + xi * wr

    # inverse rDFT over W (Hermitian fold baked into D).  Two matmuls sharing
    # one RHS instead of a sublane-axis concatenate of [yr; yi].
    rr = jnp.dot(yr, dblk_ref[...], preferred_element_type=jnp.float32)     # (rows, 2*ctw)
    ri = jnp.dot(yi, dblk_ref[...], preferred_element_type=jnp.float32)
    vr = rr[:, 0:ctw] - ri[:, ctw:2 * ctw]                                  # (rows, ctw)
    vi = rr[:, ctw:2 * ctw] + ri[:, 0:ctw]

    # inverse DFT over H; keep the real part only:  out = Cr@vr - Ci@vi
    o_ref[...] = (jnp.dot(cc_ref[0], vr, preferred_element_type=jnp.float32)
                  - jnp.dot(cc_ref[1], vi, preferred_element_type=jnp.float32))


# ----------------------------------------------------------------------------
# jitted forward
# ----------------------------------------------------------------------------
@functools.partial(jax.jit, static_argnames=("ct", "gf"))
def _spectral_fft_jit(x, w_packed, ct, gf):
    B, C, H, W = x.shape
    assert H == W, "height and width are not equal"
    Wf = W // 2 + 1
    F = _padded_freqs(Wf, ct)
    assert C % (gf * ct) == 0
    Gc = C // (gf * ct)
    rows = gf * B * H
    ctw, ctf = ct * W, ct * F
    assert rows % 8 == 0
    assert w_packed.shape == (Gc, 2, rows, ctf)

    # constants: cached numpy, embedded at trace time (no per-call rebuild/H2D)
    AA_np, Bblk_np, Dblk_np, CC2_np = _build_constants(H, W, Wf, F, ct, gf * B)
    AA, Bblk, Dblk, CC2 = (jnp.asarray(AA_np), jnp.asarray(Bblk_np),
                           jnp.asarray(Dblk_np), jnp.asarray(CC2_np))

    # lane-dense, row-folded input layout: (Gc, gf*B*H, ct*W)
    x_in = (x.astype(jnp.float32)
             .reshape(B, Gc, gf, ct, H, W)
             .transpose(1, 2, 0, 4, 3, 5)                 # (Gc, gf, B, H, ct, W)
             .reshape(Gc, rows, ctw))

    grid_spec = pltpu.PrefetchScalarGridSpec(
        num_scalar_prefetch=0,
        grid=(Gc,),                                       # >= 2 parallel steps (v7x megacore)
        in_specs=[
            pl.BlockSpec((None, rows, ctw), lambda g: (g, 0, 0)),        # x tile
            pl.BlockSpec((None, 2, rows, ctf), lambda g: (g, 0, 0, 0)),  # packed weight tile
            pl.BlockSpec((2 * rows, rows), lambda g: (0, 0)),            # kron(I,[Ar;Ai])
            pl.BlockSpec((ctw, 2 * ctf), lambda g: (0, 0)),              # blkdiag [Br|Bi]
            pl.BlockSpec((ctf, 2 * ctw), lambda g: (0, 0)),              # blkdiag [Dr|Di]
            pl.BlockSpec((2, rows, rows), lambda g: (0, 0, 0)),          # kron(I,Cr), kron(I,Ci)
        ],
        out_specs=pl.BlockSpec((None, rows, ctw), lambda g: (g, 0, 0)),
    )

    out = pl.pallas_call(
        _spectral_kernel,
        out_shape=jax.ShapeDtypeStruct((Gc, rows, ctw), jnp.float32),
        grid_spec=grid_spec,
        compiler_params=pltpu.CompilerParams(
            dimension_semantics=("parallel",)),
    )(x_in, w_packed, AA, Bblk, Dblk, CC2)

    # un-fold back to (B, C, H, W); fuses with the kernel epilogue under jit
    return (out.reshape(Gc, gf, B, H, ct, W)
               .transpose(2, 0, 1, 4, 3, 5)
               .reshape(B, C, H, W))


def spectral_fft_pallas(x, w_packed, *, ct=None, gf=None):
    """x: (B, C, H, W); w_packed: output of pack_spectral_weight (same ct/gf)."""
    if ct is None or gf is None:
        ct, gf = _choose_tiling(x.shape[1])
    return _spectral_fft_jit(x, w_packed, ct=ct, gf=gf)


# ----------------------------------------------------------------------------
# pure-JAX reference matching the PyTorch forward
# ----------------------------------------------------------------------------
def _reference(x, weight):
    B, C, H, W = x.shape
    w_c = weight[..., 0] + 1j * weight[..., 1]
    X = jnp.fft.rfft2(x.astype(jnp.float32), axes=(2, 3), norm="ortho")
    X = X * w_c[None]
    y = jnp.fft.irfft2(X, s=(H, W), axes=(2, 3), norm="ortho")
    return y.reshape(B, C, H, W).astype(jnp.float32)


if __name__ == "__main__":
    # SpectralFFT(dim=64, h=16, w=16) -> complex_weight shape (64, 16, 9, 2)
    B, C, H, W = 2, 64, 16, 16
    Wf = W // 2 + 1

    key = jax.random.PRNGKey(0)
    kx, kw = jax.random.split(key)
    x = jax.random.normal(kx, (B, C, H, W), dtype=jnp.float32)
    complex_weight = jax.random.normal(kw, (C, H, Wf, 2), dtype=jnp.float32) * 0.02

    # one-time weight packing (parameter-load time), then the jitted forward
    w_packed = pack_spectral_weight(complex_weight, batch=B)
    out = spectral_fft_pallas(x, w_packed)
    out = jax.block_until_ready(out)

    ref = _reference(x, complex_weight)
    np.testing.assert_allclose(np.asarray(out), np.asarray(ref),
                               rtol=2e-3, atol=2e-3)
    print("KERNEL_OK")
</pallas_src>

<mosaic_0001>
module attributes {stable_mosaic.version = 11 : i64} {
  func.func @_spectral_kernel(%arg0: i32, %arg1: memref<1x64x128xf32, #tpu.memory_space<vmem>>, %arg2: memref<1x2x64x128xf32, #tpu.memory_space<vmem>>, %arg3: memref<128x64xf32, #tpu.memory_space<vmem>>, %arg4: memref<128x256xf32, #tpu.memory_space<vmem>>, %arg5: memref<128x256xf32, #tpu.memory_space<vmem>>, %arg6: memref<2x64x64xf32, #tpu.memory_space<vmem>>, %arg7: memref<1x64x128xf32, #tpu.memory_space<vmem>>) attributes {dimension_semantics = [#tpu.dimension_semantics<parallel>], iteration_bounds = array<i64: 4>, scalar_prefetch = 0 : i64, scratch_operands = 0 : i64, tpu.core_type = #tpu.core_type<tc>, window_params = [{transform_indices = @transform_0, window_bounds = array<i64: 1, 64, 128>}, {transform_indices = @transform_1, window_bounds = array<i64: 1, 2, 64, 128>}, {pipeline_mode = #tpu.pipeline_mode<synchronous>, transform_indices = @transform_2, window_bounds = array<i64: 128, 64>}, {pipeline_mode = #tpu.pipeline_mode<synchronous>, transform_indices = @transform_3, window_bounds = array<i64: 128, 256>}, {pipeline_mode = #tpu.pipeline_mode<synchronous>, transform_indices = @transform_4, window_bounds = array<i64: 128, 256>}, {pipeline_mode = #tpu.pipeline_mode<synchronous>, transform_indices = @transform_5, window_bounds = array<i64: 2, 64, 64>}, {transform_indices = @transform_6, window_bounds = array<i64: 1, 64, 128>}]} {
    %c0 = arith.constant 0 : index
    %c0_0 = arith.constant 0 : index
    %c0_1 = arith.constant 0 : index
    %0 = vector.load %arg1[%c0, %c0_0, %c0_1] : memref<1x64x128xf32, #tpu.memory_space<vmem>>, vector<1x64x128xf32>
    %1 = vector.shape_cast %0 : vector<1x64x128xf32> to vector<64x128xf32>
    %c0_2 = arith.constant 0 : index
    %c0_3 = arith.constant 0 : index
    %2 = vector.load %arg3[%c0_2, %c0_3] : memref<128x64xf32, #tpu.memory_space<vmem>>, vector<128x64xf32>
    %cst = arith.constant dense<0.000000e+00> : vector<128x128xf32>
    %3 = tpu.matmul %2, %1, %cst {dimension_numbers = #tpu.dot_dimension_numbers<[1], [0], [0], [1], [0, 0, 1, 1], [], []>} : vector<128x64xf32>, vector<64x128xf32>, vector<128x128xf32> -> vector<128x128xf32>
    %c0_4 = arith.constant 0 : index
    %c0_5 = arith.constant 0 : index
    %4 = vector.load %arg4[%c0_4, %c0_5] : memref<128x256xf32, #tpu.memory_space<vmem>>, vector<128x256xf32>
    %cst_6 = arith.constant dense<0.000000e+00> : vector<128x256xf32>
    %5 = tpu.matmul %3, %4, %cst_6 {dimension_numbers = #tpu.dot_dimension_numbers<[1], [0], [0], [1], [0, 0, 1, 1], [], []>} : vector<128x128xf32>, vector<128x256xf32>, vector<128x256xf32> -> vector<128x256xf32>
    %6 = vector.extract_strided_slice %5 {offsets = [0, 0], sizes = [64, 128], strides = [1, 1]} : vector<128x256xf32> to vector<64x128xf32>
    %7 = vector.extract_strided_slice %5 {offsets = [64, 128], sizes = [64, 128], strides = [1, 1]} : vector<128x256xf32> to vector<64x128xf32>
    %8 = arith.subf %6, %7 : vector<64x128xf32>
    %9 = vector.extract_strided_slice %5 {offsets = [0, 128], sizes = [64, 128], strides = [1, 1]} : vector<128x256xf32> to vector<64x128xf32>
    %10 = vector.extract_strided_slice %5 {offsets = [64, 0], sizes = [64, 128], strides = [1, 1]} : vector<128x256xf32> to vector<64x128xf32>
    %11 = arith.addf %9, %10 : vector<64x128xf32>
    %c0_7 = arith.constant 0 : index
    %c0_8 = arith.constant 0 : index
    %c0_9 = arith.constant 0 : index
    %c0_10 = arith.constant 0 : index
    %12 = vector.load %arg2[%c0_7, %c0_8, %c0_9, %c0_10] : memref<1x2x64x128xf32, #tpu.memory_space<vmem>>, vector<1x1x64x128xf32>
    %13 = vector.shape_cast %12 : vector<1x1x64x128xf32> to vector<64x128xf32>
    %c0_11 = arith.constant 0 : index
    %c1 = arith.constant 1 : index
    %c0_12 = arith.constant 0 : index
    %c0_13 = arith.constant 0 : index
    %14 = vector.load %arg2[%c0_11, %c1, %c0_12, %c0_13] : memref<1x2x64x128xf32, #tpu.memory_space<vmem>>, vector<1x1x64x128xf32>
    %15 = vector.shape_cast %14 : vector<1x1x64x128xf32> to vector<64x128xf32>
    %16 = arith.mulf %8, %13 : vector<64x128xf32>
    %17 = arith.mulf %11, %15 : vector<64x128xf32>
    %18 = arith.subf %16, %17 : vector<64x128xf32>
    %19 = arith.mulf %8, %15 : vector<64x128xf32>
    %20 = arith.mulf %11, %13 : vector<64x128xf32>
    %21 = arith.addf %19, %20 : vector<64x128xf32>
    %c0_14 = arith.constant 0 : index
    %c0_15 = arith.constant 0 : index
    %22 = vector.load %arg5[%c0_14, %c0_15] : memref<128x256xf32, #tpu.memory_space<vmem>>, vector<128x256xf32>
    %cst_16 = arith.constant dense<0.000000e+00> : vector<64x256xf32>
    %23 = tpu.matmul %18, %22, %cst_16 {dimension_numbers = #tpu.dot_dimension_numbers<[1], [0], [0], [1], [0, 0, 1, 1], [], []>} : vector<64x128xf32>, vector<128x256xf32>, vector<64x256xf32> -> vector<64x256xf32>
    %c0_17 = arith.constant 0 : index
    %c0_18 = arith.constant 0 : index
    %24 = vector.load %arg5[%c0_17, %c0_18] : memref<128x256xf32, #tpu.memory_space<vmem>>, vector<128x256xf32>
    %cst_19 = arith.constant dense<0.000000e+00> : vector<64x256xf32>
    %25 = tpu.matmul %21, %24, %cst_19 {dimension_numbers = #tpu.dot_dimension_numbers<[1], [0], [0], [1], [0, 0, 1, 1], [], []>} : vector<64x128xf32>, vector<128x256xf32>, vector<64x256xf32> -> vector<64x256xf32>
    %26 = vector.extract_strided_slice %23 {offsets = [0, 0], sizes = [64, 128], strides = [1, 1]} : vector<64x256xf32> to vector<64x128xf32>
    %27 = vector.extract_strided_slice %25 {offsets = [0, 128], sizes = [64, 128], strides = [1, 1]} : vector<64x256xf32> to vector<64x128xf32>
    %28 = arith.subf %26, %27 : vector<64x128xf32>
    %29 = vector.extract_strided_slice %23 {offsets = [0, 128], sizes = [64, 128], strides = [1, 1]} : vector<64x256xf32> to vector<64x128xf32>
    %30 = vector.extract_strided_slice %25 {offsets = [0, 0], sizes = [64, 128], strides = [1, 1]} : vector<64x256xf32> to vector<64x128xf32>
    %31 = arith.addf %29, %30 : vector<64x128xf32>
    %c0_20 = arith.constant 0 : index
    %c0_21 = arith.constant 0 : index
    %c0_22 = arith.constant 0 : index
    %32 = vector.load %arg6[%c0_20, %c0_21, %c0_22] : memref<2x64x64xf32, #tpu.memory_space<vmem>>, vector<1x64x64xf32>
    %33 = vector.shape_cast %32 : vector<1x64x64xf32> to vector<64x64xf32>
    %cst_23 = arith.constant dense<0.000000e+00> : vector<64x128xf32>
    %34 = tpu.matmul %33, %28, %cst_23 {dimension_numbers = #tpu.dot_dimension_numbers<[1], [0], [0], [1], [0, 0, 1, 1], [], []>} : vector<64x64xf32>, vector<64x128xf32>, vector<64x128xf32> -> vector<64x128xf32>
    %c1_24 = arith.constant 1 : index
    %c0_25 = arith.constant 0 : index
    %c0_26 = arith.constant 0 : index
    %35 = vector.load %arg6[%c1_24, %c0_25, %c0_26] : memref<2x64x64xf32, #tpu.memory_space<vmem>>, vector<1x64x64xf32>
    %36 = vector.shape_cast %35 : vector<1x64x64xf32> to vector<64x64xf32>
    %cst_27 = arith.constant dense<0.000000e+00> : vector<64x128xf32>
    %37 = tpu.matmul %36, %31, %cst_27 {dimension_numbers = #tpu.dot_dimension_numbers<[1], [0], [0], [1], [0, 0, 1, 1], [], []>} : vector<64x64xf32>, vector<64x128xf32>, vector<64x128xf32> -> vector<64x128xf32>
    %38 = arith.subf %34, %37 : vector<64x128xf32>
    %c0_28 = arith.constant 0 : index
    %c0_29 = arith.constant 0 : index
    %c0_30 = arith.constant 0 : index
    %39 = vector.load %arg7[%c0_28, %c0_29, %c0_30] : memref<1x64x128xf32, #tpu.memory_space<vmem>>, vector<1x64x128xf32>
    %40 = vector.shape_cast %39 : vector<1x64x128xf32> to vector<64x128xf32>
    %41 = vector.shape_cast %38 : vector<64x128xf32> to vector<1x64x128xf32>
    tpu.vector_store %arg7[%c0_28, %c0_29, %c0_30], %41 {strides = array<i32>} : memref<1x64x128xf32, #tpu.memory_space<vmem>>, vector<1x64x128xf32>,
    return
  }
  func.func @transform_0(%arg0: i32) -> (i32, i32, i32) {
    %c0_i32 = arith.constant 0 : i32
    %c0_i32_0 = arith.constant 0 : i32
    %c0_i32_1 = arith.constant 0 : i32
    return %arg0, %c0_i32, %c0_i32_0 : i32, i32, i32
  }
  func.func @transform_1(%arg0: i32) -> (i32, i32, i32, i32) {
    %c0_i32 = arith.constant 0 : i32
    %c0_i32_0 = arith.constant 0 : i32
    %c0_i32_1 = arith.constant 0 : i32
    %c0_i32_2 = arith.constant 0 : i32
    return %arg0, %c0_i32, %c0_i32_0, %c0_i32_1 : i32, i32, i32, i32
  }
  func.func @transform_2(%arg0: i32) -> (i32, i32) {
    %c0_i32 = arith.constant 0 : i32
    %c0_i32_0 = arith.constant 0 : i32
    %c0_i32_1 = arith.constant 0 : i32
    return %c0_i32, %c0_i32_0 : i32, i32
  }
  func.func @transform_3(%arg0: i32) -> (i32, i32) {
    %c0_i32 = arith.constant 0 : i32
    %c0_i32_0 = arith.constant 0 : i32
    %c0_i32_1 = arith.constant 0 : i32
    return %c0_i32, %c0_i32_0 : i32, i32
  }
  func.func @transform_4(%arg0: i32) -> (i32, i32) {
    %c0_i32 = arith.constant 0 : i32
    %c0_i32_0 = arith.constant 0 : i32
    %c0_i32_1 = arith.constant 0 : i32
    return %c0_i32, %c0_i32_0 : i32, i32
  }
  func.func @transform_5(%arg0: i32) -> (i32, i32, i32) {
    %c0_i32 = arith.constant 0 : i32
    %c0_i32_0 = arith.constant 0 : i32
    %c0_i32_1 = arith.constant 0 : i32
    %c0_i32_2 = arith.constant 0 : i32
    return %c0_i32, %c0_i32_0, %c0_i32_1 : i32, i32, i32
  }
  func.func @transform_6(%arg0: i32) -> (i32, i32, i32) {
    %c0_i32 = arith.constant 0 : i32
    %c0_i32_0 = arith.constant 0 : i32
    %c0_i32_1 = arith.constant 0 : i32
    return %arg0, %c0_i32, %c0_i32_0 : i32, i32, i32
  }
}

</mosaic_0001>

<bundles_post_ra>
// kernel: _spectral_fft_jit.1
= control target key start
LH: loop header
LB: loop body
LE: loop exit
PB: predicated region body
PF: predicated region fallthrough
CT: control target
= control target key end

     0   :  { %s1210_s21 = smov 0   ;;  %s1664_s0 = inlined_call_operand.vmem [shape: f32[4,64,128], index: 0, kind: input, shape index: {}]   ;;  %s1665_s1 = inlined_call_operand.vmem [shape: f32[4,2,64,128], index: 1, kind: input, shape index: {}]   ;;  %s1666_s2 = inlined_call_operand.vmem [shape: f32[128,64], index: 2, kind: input, shape index: {}]   ;;  %s1667_s3 = inlined_call_operand.vmem [shape: f32[128,256], index: 3, kind: input, shape index: {}]   ;;  %s1668_s4 = inlined_call_operand.vmem [shape: f32[128,256], index: 4, kind: input, shape index: {}]   ;;  %s1669_s5 = inlined_call_operand.vmem [shape: f32[2,64,64], index: 5, kind: input, shape index: {}]   ;;  %s1670_s6 = inlined_call_operand.vmem [shape: f32[4,64,128], index: 6, kind: output, shape index: {}]  }
   0x1 LB: > { %s1095_s22 = sadd.s32 4294967295, %s1173_s21   ;;  %p1099_p0 = scmp.ge.s32.totalorder %s1173_s21, 1  ;;  %s1173_s21 = sphi %s1210_s21, %s16_s21  }
   0x2   : > { %p222_p1 = scmp.lt.s32.totalorder %s1173_s21, 5 }
   0x4   : > { %p223_p2 = pnand %p1099_p0, %p222_p1 }
   0x5   : > { %p257_p3 = scmp.lt.s32.totalorder (!%p223_p2), %s1095_s22, 3 }
   0x6   : > { %226 = sbr.rel (%p223_p2) target bundleno = 818 (0x332), region = 44 }
   0xb   : > { %s1672_s22 = smov (!%p257_p3, %s1095_s22), 3  ;;  %v280_v8 = vld [vmem:[%s1666_s2] sm:$0xff]  ;;  %vm296_vm0 = vcmask 523264   ;;  %v281_v9 = vld [vmem:[%s1666_s2 + $0x8] sm:$0xff]  ;;  %v282_v10 = vld [vmem:[%s1666_s2 + $0x10] sm:$0xff] }
   0xc   : > { %s1156_s23 = sshll.u32 %s1672_s22, 6  ;;  %v283_v11 = vld [vmem:[%s1666_s2 + $0x18] sm:$0xff]  ;;  %v284_v12 = vld [vmem:[%s1666_s2 + $0x20] sm:$0xff]  ;;  %v285_v13 = vld [vmem:[%s1666_s2 + $0x28] sm:$0xff]  ;;  %s1157_s16 = sshll.u32 %s1672_s22, 7 }
   0xd   : > { %s261_s26 = scalar_lea.vmem %s1664_s0, %s1156_s23  ;;  %v286_v14 = vld [vmem:[%s1666_s2 + $0x30] sm:$0xff]  ;;  %v287_v15 = vld [vmem:[%s1666_s2 + $0x38] sm:$0xff]  ;;  %v288_v18 = vld [vmem:[%s1666_s2 + $0x40] sm:$0xff]  ;;  %s1544_s19 = scalar_lea.vmem %s1665_s1, %s1157_s16 }
   0xe   : > { %v279_v0 = vld [vmem:[%s261_s26 + $0x38] sm:$0xff]  ;;  %v278_v1 = vld [vmem:[%s261_s26 + $0x30] sm:$0xff]  ;;  %v277_v2 = vld [vmem:[%s261_s26 + $0x28] sm:$0xff]  ;;  %s271_s12 = scalar_lea.vmem %s1670_s6, %s1156_s23 }
   0xf   : > { %353 = vmatpush.msra.mxu0 %v279_v0  ;;  %v276_v3 = vld [vmem:[%s261_s26 + $0x20] sm:$0xff]  ;;  %v275_v4 = vld [vmem:[%s261_s26 + $0x18] sm:$0xff]  ;;  %v274_v5 = vld [vmem:[%s261_s26 + $0x10] sm:$0xff] }
  0x10   : > { %v273_v6 = vld [vmem:[%s261_s26 + $0x8] sm:$0xff]  ;;  %v272_v7 = vld [vmem:[%s261_s26] sm:$0xff]  ;;  %v440_v16 = vld [vmem:[%s1667_s3 + $0xf0] sm:$0xff] }
  0x11   : > { %354 = vmatpush.msra.mxu0 %v278_v1  ;;  %v441_v17 = vld [vmem:[%s1667_s3 + $0xf8] sm:$0xff]  ;;  %442 = vmatpush.msra.mxu1 %v440_v16  ;;  %v438_v19 = vld [vmem:[%s1667_s3 + $0xe0] sm:$0xff]  ;;  %v439_v20 = vld [vmem:[%s1667_s3 + $0xe8] sm:$0xff] }
  0x12   : > { %507 = vmatpush.msra.mxu2 %v441_v17  ;;  %v436_v21 = vld [vmem:[%s1667_s3 + $0xd0] sm:$0xff]  ;;  %v437_v22 = vld [vmem:[%s1667_s3 + $0xd8] sm:$0xff]  ;;  %v434_v23 = vld [vmem:[%s1667_s3 + $0xc0] sm:$0xff] }
  0x13   : > { %355 = vmatpush.msra.mxu0 %v277_v2  ;;  %443 = vmatpush.msra.mxu1 %v438_v19  ;;  %v435_v24 = vld [vmem:[%s1667_s3 + $0xc8] sm:$0xff]  ;;  %v432_v25 = vld [vmem:[%s1667_s3 + $0xb0] sm:$0xff]  ;;  %v433_v26 = vld [vmem:[%s1667_s3 + $0xb8] sm:$0xff] }
  0x14   : > { %508 = vmatpush.msra.mxu2 %v439_v20  ;;  %v289_v27 = vld [vmem:[%s1666_s2 + $0x48] sm:$0xff]  ;;  %v430_v28 = vld [vmem:[%s1667_s3 + $0xa0] sm:$0xff]  ;;  %v428_v30 = vld [vmem:[%s1667_s3 + $0x90] sm:$0xff] }
  0x15   : > { %356 = vmatpush.msra.mxu0 %v276_v3  ;;  %444 = vmatpush.msra.mxu1 %v436_v21  ;;  %v431_v29 = vld [vmem:[%s1667_s3 + $0xa8] sm:$0xff]  ;;  %v429_v31 = vld [vmem:[%s1667_s3 + $0x98] sm:$0xff]  ;;  %v426_v32 = vld [vmem:[%s1667_s3 + $0x80] sm:$0xff] }
  0x16   : > { %509 = vmatpush.msra.mxu2 %v437_v22  ;;  %v427_v33 = vld [vmem:[%s1667_s3 + $0x88] sm:$0xff]  ;;  %v424_v34 = vld [vmem:[%s1667_s3 + $0x70] sm:$0xff]  ;;  %v425_v35 = vld [vmem:[%s1667_s3 + $0x78] sm:$0xff] }
  0x17   : > { %357 = vmatpush.msra.mxu0 %v275_v4  ;;  %445 = vmatpush.msra.mxu1 %v434_v23  ;;  %v290_v36 = vld [vmem:[%s1666_s2 + $0x50] sm:$0xff]  ;;  %v422_v37 = vld [vmem:[%s1667_s3 + $0x60] sm:$0xff]  ;;  %v423_v38 = vld [vmem:[%s1667_s3 + $0x68] sm:$0xff] }
  0x18   : > { %510 = vmatpush.msra.mxu2 %v435_v24  ;;  %v420_v39 = vld [vmem:[%s1667_s3 + $0x50] sm:$0xff]  ;;  %v421_v40 = vld [vmem:[%s1667_s3 + $0x58] sm:$0xff]  ;;  %v418_v41 = vld [vmem:[%s1667_s3 + $0x40] sm:$0xff] }
  0x19   : > { %358 = vmatpush.msra.mxu0 %v274_v5  ;;  %446 = vmatpush.msra.mxu1 %v432_v25  ;;  %v419_v42 = vld [vmem:[%s1667_s3 + $0x48] sm:$0xff]  ;;  %v416_v43 = vld [vmem:[%s1667_s3 + $0x30] sm:$0xff]  ;;  %v417_v44 = vld [vmem:[%s1667_s3 + $0x38] sm:$0xff] }
  0x1a   : > { %511 = vmatpush.msra.mxu2 %v433_v26  ;;  %v291_v45 = vld [vmem:[%s1666_s2 + $0x58] sm:$0xff]  ;;  %v414_v46 = vld [vmem:[%s1667_s3 + $0x20] sm:$0xff]  ;;  %v415_v47 = vld [vmem:[%s1667_s3 + $0x28] sm:$0xff] }
  0x1b   : > { %359 = vmatpush.msra.mxu0 %v273_v6  ;;  %447 = vmatpush.msra.mxu1 %v430_v28  ;;  %v412_v48 = vld [vmem:[%s1667_s3 + $0x10] sm:$0xff]  ;;  %v413_v49 = vld [vmem:[%s1667_s3 + $0x18] sm:$0xff]  ;;  %v410_v50 = vld [vmem:[%s1667_s3] sm:$0xff] }
  0x1c   : > { %512 = vmatpush.msra.mxu2 %v431_v29  ;;  %v411_v51 = vld [vmem:[%s1667_s3 + $0x8] sm:$0xff]  ;;  %v292_v52 = vld [vmem:[%s1666_s2 + $0x60] sm:$0xff]  ;;  %v294_v54 = vld [vmem:[%s1666_s2 + $0x70] sm:$0xff] }
  0x1d   : > { %360 = vmatpush.msra.mxu0 %v272_v7  ;;  %448 = vmatpush.msra.mxu1 %v428_v30  ;;  %v293_v53 = vld [vmem:[%s1666_s2 + $0x68] sm:$0xff]  ;;  %v295_v55 = vld [vmem:[%s1666_s2 + $0x78] sm:$0xff]  ;;  %v679_v17 = vld [vmem:[%s1668_s4 + $0xd0] sm:$0xff] }
  0x1e   : > { %1106 = vmatmul.msk.f32.vlgmr.msra.gmra.mxu0 %vm296_vm0, %v280_v8  ;;  %513 = vmatpush.msra.mxu2 %v429_v31  ;;  %v677_v19 = vld [vmem:[%s1668_s4 + $0xc0] sm:$0xff]  ;;  %v1428_v20 = vld [vmem:[%s1668_s4 + $0xc8] sm:$0xff]  ;;  %v675_v21 = vld [vmem:[%s1668_s4 + $0xb0] sm:$0xff] }
  0x1f   : > { %449 = vmatpush.msra.mxu1 %v426_v32  ;;  %v1438_v22 = vld [vmem:[%s1668_s4 + $0xb8] sm:$0xff]  ;;  %v673_v24 = vld [vmem:[%s1668_s4 + $0xa0] sm:$0xff]  ;;  %v1449_v25 = vld [vmem:[%s1668_s4 + $0xa8] sm:$0xff] }
  0x20   : > { %514 = vmatpush.msra.mxu2 %v427_v33  ;;  %v1459_v28 = vld [vmem:[%s1668_s4 + $0x98] sm:$0xff]  ;;  %v669_v29 = vld [vmem:[%s1668_s4 + $0x80] sm:$0xff]  ;;  %v670_v30 = vld [vmem:[%s1668_s4 + $0x88] sm:$0xff] }
  0x21   : > { %450 = vmatpush.msra.mxu1 %v424_v34  ;;  %v667_v31 = vld [vmem:[%s1668_s4 + $0x70] sm:$0xff]  ;;  %v668_v32 = vld [vmem:[%s1668_s4 + $0x78] sm:$0xff]  ;;  %v665_v34 = vld [vmem:[%s1668_s4 + $0x60] sm:$0xff] }
  0x22   : > { %515 = vmatpush.msra.mxu2 %v425_v35  ;;  %v666_v35 = vld [vmem:[%s1668_s4 + $0x68] sm:$0xff] }
  0x23   : > { %451 = vmatpush.msra.mxu1 %v422_v37  ;;  %v663_v37 = vld [vmem:[%s1668_s4 + $0x50] sm:$0xff] }
  0x24   : > { %516 = vmatpush.msra.mxu2 %v423_v38  ;;  %v664_v38 = vld [vmem:[%s1668_s4 + $0x58] sm:$0xff] }
  0x25   : > { %452 = vmatpush.msra.mxu1 %v420_v39  ;;  %v661_v39 = vld [vmem:[%s1668_s4 + $0x40] sm:$0xff] }
  0x26   : > { %1107 = vmatmul.msk.f32.gmra.mxu0 %vm296_vm0, %v281_v9  ;;  %517 = vmatpush.msra.mxu2 %v421_v40  ;;  %v662_v40 = vld [vmem:[%s1668_s4 + $0x48] sm:$0xff] }
  0x27   : > { %453 = vmatpush.msra.mxu1 %v418_v41  ;;  %v659_v41 = vld [vmem:[%s1668_s4 + $0x30] sm:$0xff] }
  0x28   : > { %518 = vmatpush.msra.mxu2 %v419_v42  ;;  %v660_v42 = vld [vmem:[%s1668_s4 + $0x38] sm:$0xff] }
  0x29   : > { %454 = vmatpush.msra.mxu1 %v416_v43 }
  0x2a   : > { %519 = vmatpush.msra.mxu2 %v417_v44  ;;  %v657_v44 = vld [vmem:[%s1668_s4 + $0x20] sm:$0xff] }
  0x2b   : > { %455 = vmatpush.msra.mxu1 %v414_v46 }
  0x2c   : > { %520 = vmatpush.msra.mxu2 %v415_v47  ;;  %v655_v47 = vld [vmem:[%s1668_s4 + $0x10] sm:$0xff] }
  0x2d   : > { %456 = vmatpush.msra.mxu1 %v412_v48  ;;  %v656_v48 = vld [vmem:[%s1668_s4 + $0x18] sm:$0xff] }
  0x2e   : > { %1108 = vmatmul.msk.f32.gmra.mxu0 %vm296_vm0, %v282_v10  ;;  %521 = vmatpush.msra.mxu2 %v413_v49  ;;  %v653_v49 = vld [vmem:[%s1668_s4] sm:$0xff] }
  0x2f   : > { %457 = vmatpush.msra.mxu1 %v410_v50  ;;  %v654_v50 = vld [vmem:[%s1668_s4 + $0x8] sm:$0xff] }
  0x30   : > { %522 = vmatpush.msra.mxu2 %v411_v51 }
  0x36   : > { %1109 = vmatmul.msk.f32.gmra.mxu0 %vm296_vm0, %v283_v11  ;;  %v683_v11 = vld [vmem:[%s1668_s4 + $0xf0] sm:$0xff] }
  0x37   : > { %685 = vmatpush.msra.mxu3 %v683_v11  ;;  %767 = vmatpush.msrb.mxu0 %v683_v11 }
  0x3e   : > { %1110 = vmatmul.msk.f32.gmra.mxu0 %vm296_vm0, %v284_v12  ;;  %v1398_v12 = vld [vmem:[%s1668_s4 + $0xf8] sm:$0xff] }
  0x3f   : > { %808 = vmatpush.msrb.mxu1 %v1398_v12 }
  0x46   : > { %1111 = vmatmul.msk.f32.gmra.mxu0 %vm296_vm0, %v285_v13 }
  0x4e   : > { %1112 = vmatmul.msk.f32.gmra.mxu0 %vm296_vm0, %v286_v14  ;;  %v681_v14 = vld [vmem:[%s1668_s4 + $0xe0] sm:$0xff] }
  0x4f   : > { %686 = vmatpush.msra.mxu3 %v681_v14  ;;  %768 = vmatpush.msrb.mxu0 %v681_v14 }
  0x51   : > { %687 = vmatpush.msra.mxu3 %v679_v17  ;;  %769 = vmatpush.msrb.mxu0 %v679_v17  ;;  %v1124_v17 = vld [vmem:[%s1544_s19 + $0x50] sm:$0xff] }
  0x53   : > { %688 = vmatpush.msra.mxu3 %v677_v19  ;;  %770 = vmatpush.msrb.mxu0 %v677_v19 }
  0x55   : > { %689 = vmatpush.msra.mxu3 %v675_v21  ;;  %771 = vmatpush.msrb.mxu0 %v675_v21 }
  0x56   : > { %1113 = vmatmul.msk.f32.gmra.mxu0 %vm296_vm0, %v287_v15  ;;  %v1409_v15 = vld [vmem:[%s1668_s4 + $0xe8] sm:$0xff] }
  0x57   : > { %809 = vmatpush.msrb.mxu1 %v1409_v15  ;;  %690 = vmatpush.msra.mxu3 %v673_v24 }
  0x58   : > { %772 = vmatpush.msrb.mxu0 %v673_v24 }
  0x5e   : > { %1114 = vmatmul.msk.f32.gmra.mxu0 %vm296_vm0, %v288_v18  ;;  %v1419_v18 = vld [vmem:[%s1668_s4 + $0xd8] sm:$0xff] }
  0x5f   : > { %810 = vmatpush.msrb.mxu1 %v1419_v18 }
  0x61   : > { %811 = vmatpush.msrb.mxu1 %v1428_v20 }
  0x63   : > { %812 = vmatpush.msrb.mxu1 %v1438_v22 }
  0x65   : > { %813 = vmatpush.msrb.mxu1 %v1449_v25 }
  0x66   : > { %1115 = vmatmul.msk.f32.gmra.mxu0 %vm296_vm0, %v289_v27  ;;  %v671_v27 = vld [vmem:[%s1668_s4 + $0x90] sm:$0xff] }
  0x67   : > { %691 = vmatpush.msra.mxu3 %v671_v27  ;;  %773 = vmatpush.msrb.mxu0 %v671_v27 }
  0x68   : > { %814 = vmatpush.msrb.mxu1 %v1459_v28 }
  0x69   : > { %692 = vmatpush.msra.mxu3 %v669_v29  ;;  %774 = vmatpush.msrb.mxu0 %v669_v29  ;;  %v1125_v29 = vld [vmem:[%s1544_s19 + $0x58] sm:$0xff] }
  0x6a   : > { %815 = vmatpush.msrb.mxu1 %v670_v30 }
  0x6b   : > { %693 = vmatpush.msra.mxu3 %v667_v31  ;;  %775 = vmatpush.msrb.mxu0 %v667_v31 }
  0x6c   : > { %816 = vmatpush.msrb.mxu1 %v668_v32 }
  0x6d   : > { %694 = vmatpush.msra.mxu3 %v665_v34  ;;  %776 = vmatpush.msrb.mxu0 %v665_v34 }
  0x6e   : > { %1116 = vmatmul.msk.f32.gmra.mxu0 %vm296_vm0, %v290_v36  ;;  %817 = vmatpush.msrb.mxu1 %v666_v35 }
  0x6f   : > { %695 = vmatpush.msra.mxu3 %v663_v37  ;;  %777 = vmatpush.msrb.mxu0 %v663_v37 }
  0x70   : > { %818 = vmatpush.msrb.mxu1 %v664_v38 }
  0x71   : > { %696 = vmatpush.msra.mxu3 %v661_v39  ;;  %778 = vmatpush.msrb.mxu0 %v661_v39 }
  0x72   : > { %819 = vmatpush.msrb.mxu1 %v662_v40 }
  0x73   : > { %697 = vmatpush.msra.mxu3 %v659_v41  ;;  %779 = vmatpush.msrb.mxu0 %v659_v41  ;;  %v1126_v41 = vld [vmem:[%s1544_s19 + $0x60] sm:$0xff] }
  0x74   : > { %820 = vmatpush.msrb.mxu1 %v660_v42 }
  0x75   : > { %698 = vmatpush.msra.mxu3 %v657_v44  ;;  %780 = vmatpush.msrb.mxu0 %v657_v44 }
  0x76   : > { %1117 = vmatmul.msk.f32.gmra.mxu0 %vm296_vm0, %v291_v45  ;;  %v658_v45 = vld [vmem:[%s1668_s4 + $0x28] sm:$0xff] }
  0x77   : > { %821 = vmatpush.msrb.mxu1 %v658_v45  ;;  %699 = vmatpush.msra.mxu3 %v655_v47 }
  0x78   : > { %781 = vmatpush.msrb.mxu0 %v655_v47 }
  0x79   : > { %822 = vmatpush.msrb.mxu1 %v656_v48  ;;  %700 = vmatpush.msra.mxu3 %v653_v49 }
  0x7a   : > { %782 = vmatpush.msrb.mxu0 %v653_v49 }
  0x7b   : > { %823 = vmatpush.msrb.mxu1 %v654_v50  ;;  %726 = vmatpush.msrb.mxu3 %v1398_v12 }
  0x7d   : > { %727 = vmatpush.msrb.mxu3 %v1409_v15  ;;  %v590_v15 = vld [vmem:[%s1544_s19 + $0x10] sm:$0xff] }
  0x7e   : > { %1118 = vmatmul.msk.f32.gmra.mxu0 %vm296_vm0, %v292_v52 }
  0x7f   : > { %728 = vmatpush.msrb.mxu3 %v1419_v18 }
  0x81   : > { %729 = vmatpush.msrb.mxu3 %v1428_v20 }
  0x83   : > { %730 = vmatpush.msrb.mxu3 %v1438_v22 }
  0x85   : > { %731 = vmatpush.msrb.mxu3 %v1449_v25 }
  0x86   : > { %1119 = vmatmul.msk.f32.gmra.mxu0 %vm296_vm0, %v293_v53 }
  0x87   : > { %732 = vmatpush.msrb.mxu3 %v1459_v28  ;;  %v591_v28 = vld [vmem:[%s1544_s19 + $0x18] sm:$0xff] }
  0x89   : > { %733 = vmatpush.msrb.mxu3 %v670_v30 }
  0x8b   : > { %734 = vmatpush.msrb.mxu3 %v668_v32 }
  0x8d   : > { %735 = vmatpush.msrb.mxu3 %v666_v35 }
  0x8e   : > { %1120 = vmatmul.msk.f32.gmra.mxu0 %vm296_vm0, %v294_v54 }
  0x8f   : > { %736 = vmatpush.msrb.mxu3 %v664_v38 }
  0x91   : > { %737 = vmatpush.msrb.mxu3 %v662_v40  ;;  %v592_v40 = vld [vmem:[%s1544_s19 + $0x20] sm:$0xff] }
  0x93   : > { %738 = vmatpush.msrb.mxu3 %v660_v42 }
  0x95   : > { %739 = vmatpush.msrb.mxu3 %v658_v45 }
  0x96   : > { %1121 = vmatmul.msk.f32.gmra.mxu0 %vm296_vm0, %v295_v55 }
  0x97   : > { %740 = vmatpush.msrb.mxu3 %v656_v48 }
  0x99   : > { %741 = vmatpush.msrb.mxu3 %v654_v50 }
  0x9b   : > { %v362_v56 = vpop.f32.mrf.mxu0 }
  0x9c   : > { %458 = vmatmul.f32.vlgmr.msra.gmra.mxu1 %v362_v56  ;;  %523 = vmatmul.f32.vlgmr.msra.gmra.mxu2 %v362_v56 }
  0xa3   : > { %v365_v57 = vpop.f32.mrf.mxu0 }
  0xa4   : > { %461 = vmatmul.f32.gmra.mxu1 %v365_v57  ;;  %526 = vmatmul.f32.gmra.mxu2 %v365_v57  ;;  %v588_v57 = vld [vmem:[%s1544_s19] sm:$0xff] }
  0xab   : > { %v368_v58 = vpop.f32.mrf.mxu0 }
  0xac   : > { %464 = vmatmul.f32.gmra.mxu1 %v368_v58  ;;  %529 = vmatmul.f32.gmra.mxu2 %v368_v58  ;;  %v1122_v58 = vld [vmem:[%s1544_s19 + $0x40] sm:$0xff] }
  0xb3   : > { %v371_v59 = vpop.f32.mrf.mxu0 }
  0xb4   : > { %467 = vmatmul.f32.gmra.mxu1 %v371_v59  ;;  %532 = vmatmul.f32.gmra.mxu2 %v371_v59 }
  0xbb   : > { %v374_v60 = vpop.f32.mrf.mxu0 }
  0xbc   : > { %470 = vmatmul.f32.gmra.mxu1 %v374_v60  ;;  %535 = vmatmul.f32.gmra.mxu2 %v374_v60 }
  0xc3   : > { %v377_v61 = vpop.f32.mrf.mxu0 }
  0xc4   : > { %473 = vmatmul.f32.gmra.mxu1 %v377_v61  ;;  %538 = vmatmul.f32.gmra.mxu2 %v377_v61 }
  0xcb   : > { %v380_v62 = vpop.f32.mrf.mxu0 }
  0xcc   : > { %476 = vmatmul.f32.gmra.mxu1 %v380_v62  ;;  %541 = vmatmul.f32.gmra.mxu2 %v380_v62 }
  0xd3   : > { %v383_v63 = vpop.f32.mrf.mxu0 }
  0xd4   : > { %479 = vmatmul.f32.gmra.mxu1 %v383_v63  ;;  %544 = vmatmul.f32.gmra.mxu2 %v383_v63 }
  0xdb   : > { %v386_v0 = vpop.f32.mrf.mxu0 }
  0xdc   : > { %482 = vmatmul.f32.gmra.mxu1 %v386_v0  ;;  %547 = vmatmul.f32.gmra.mxu2 %v386_v0 }
  0xe3   : > { %v389_v1 = vpop.f32.mrf.mxu0 }
  0xe4   : > { %485 = vmatmul.f32.gmra.mxu1 %v389_v1  ;;  %550 = vmatmul.f32.gmra.mxu2 %v389_v1  ;;  %v589_v1 = vld [vmem:[%s1544_s19 + $0x8] sm:$0xff] }
  0xeb   : > { %v392_v2 = vpop.f32.mrf.mxu0 }
  0xec   : > { %488 = vmatmul.f32.gmra.mxu1 %v392_v2  ;;  %553 = vmatmul.f32.gmra.mxu2 %v392_v2  ;;  %v1123_v2 = vld [vmem:[%s1544_s19 + $0x48] sm:$0xff] }
  0xf3   : > { %v395_v3 = vpop.f32.mrf.mxu0 }
  0xf4   : > { %491 = vmatmul.f32.gmra.mxu1 %v395_v3  ;;  %556 = vmatmul.f32.gmra.mxu2 %v395_v3 }
  0xfb   : > { %v398_v4 = vpop.f32.mrf.mxu0 }
  0xfc   : > { %494 = vmatmul.f32.gmra.mxu1 %v398_v4  ;;  %559 = vmatmul.f32.gmra.mxu2 %v398_v4 }
 0x103   : > { %v401_v5 = vpop.f32.mrf.mxu0 }
 0x104   : > { %497 = vmatmul.f32.gmra.mxu1 %v401_v5  ;;  %562 = vmatmul.f32.gmra.mxu2 %v401_v5 }
 0x10b   : > { %v404_v6 = vpop.f32.mrf.mxu0 }
 0x10c   : > { %500 = vmatmul.f32.gmra.mxu1 %v404_v6  ;;  %565 = vmatmul.f32.gmra.mxu2 %v404_v6 }
 0x113   : > { %v407_v7 = vpop.f32.mrf.mxu0 }
 0x114   : > { %503 = vmatmul.f32.gmra.mxu1 %v407_v7  ;;  %568 = vmatmul.f32.gmra.mxu2 %v407_v7 }
 0x119   : > { %v1386_v8 = vpop.f32.mrf.mxu1 }
 0x11f   : > { %v1388_v9 = vpop.f32.mrf.mxu2 }
 0x121   : > { %v1390_v10 = vpop.f32.mrf.mxu1 }
 0x127   : > { %v1400_v13 = vpop.f32.mrf.mxu2 }
 0x129   : > { %v1411_v16 = vpop.f32.mrf.mxu1 }
 0x12f   : > { %v1440_v23 = vpop.f32.mrf.mxu2 }
 0x131   : > { %v1451_v26 = vpop.f32.mrf.mxu1 }
 0x137   : > { %v1475_v33 = vpop.f32.mrf.mxu2 }
 0x139   : > { %v1483_v36 = vpop.f32.mrf.mxu1 }
 0x13f   : > { %v1503_v43 = vpop.f32.mrf.mxu2 }
 0x141   : > { %v1511_v46 = vpop.f32.mrf.mxu1 }
 0x147   : > { %v1526_v51 = vpop.f32.mrf.mxu2 }
 0x149   : > { %v1529_v52 = vpop.f32.mrf.mxu1 }
 0x14f   : > { %v1534_v53 = vpop.f32.mrf.mxu2 }
 0x151   : > { %v1537_v54 = vpop.f32.mrf.mxu1 }
 0x157   : > { %v1546_v55 = vpop.f32.mrf.mxu2 }
 0x159   : > { %v483_v56 = vpop.f32.mrf.mxu1 }
 0x15a   : > { %v580_v59 = vadd.f32 %v1388_v9, %v483_v56 }
 0x15c   : > { %v613_v60 = vmul.f32 %v1122_v58, %v580_v59  ;;  %v637_v61 = vmul.f32 %v588_v57, %v580_v59 }
 0x15f   : > { %v548_v62 = vpop.f32.mrf.mxu2 }
 0x160   : > { %v572_v63 = vsub.f32 %v1386_v8, %v548_v62 }
 0x161   : > { %v486_v0 = vpop.f32.mrf.mxu1 }
 0x162   : > { %v605_v3 = vmul.f32 %v588_v57, %v572_v63  ;;  %v629_v4 = vmul.f32 %v1122_v58, %v572_v63  ;;  %v581_v5 = vadd.f32 %v1400_v13, %v486_v0  ;;  %v593_v57 = vld [vmem:[%s1544_s19 + $0x28] sm:$0xff] }
 0x163   : > { %v1127_v58 = vld [vmem:[%s1544_s19 + $0x68] sm:$0xff] }
 0x164   : > { %v614_v6 = vmul.f32 %v1123_v2, %v581_v5  ;;  %v638_v7 = vmul.f32 %v589_v1, %v581_v5  ;;  %v1555_v9 = vsub.f32 %v605_v3, %v613_v60  ;;  %v645_v11 = vadd.f32 %v637_v61, %v629_v4  ;;  %v594_v3 = vld [vmem:[%s1544_s19 + $0x30] sm:$0xff] }
 0x165   : > { %v1128_v4 = vld [vmem:[%s1544_s19 + $0x70] sm:$0xff] }
 0x166   : > { %701 = vmatmul.f32.vlgmr.msra.gmra.mxu3 %v1555_v9  ;;  %783 = vmatmul.f32.vlgmr.msrb.gmra.mxu0 %v645_v11 }
 0x167   : > { %824 = vmatmul.f32.vlgmr.msrb.gmra.mxu1 %v645_v11  ;;  %v551_v8 = vpop.f32.mrf.mxu2 }
 0x168   : > { %v573_v12 = vsub.f32 %v1390_v10, %v551_v8 }
 0x169   : > { %v489_v14 = vpop.f32.mrf.mxu1 }
 0x16a   : > { %v606_v13 = vmul.f32 %v589_v1, %v573_v12  ;;  %v630_v18 = vmul.f32 %v1123_v2, %v573_v12  ;;  %v582_v19 = vadd.f32 %v1440_v23, %v489_v14 }
 0x16c   : > { %v615_v20 = vmul.f32 %v1124_v17, %v582_v19  ;;  %v639_v21 = vmul.f32 %v590_v15, %v582_v19  ;;  %v1562_v22 = vsub.f32 %v606_v13, %v614_v6  ;;  %v646_v24 = vadd.f32 %v638_v7, %v630_v18  ;;  %v1129_v13 = vld [vmem:[%s1544_s19 + $0x78] sm:$0xff] }
 0x16e   : > { %704 = vmatmul.f32.gmra.mxu3 %v1562_v22  ;;  %786 = vmatmul.f32.gmra.mxu0 %v646_v24 }
 0x16f   : > { %827 = vmatmul.f32.gmra.mxu1 %v646_v24  ;;  %v554_v25 = vpop.f32.mrf.mxu2 }
 0x170   : > { %v574_v10 = vsub.f32 %v1411_v16, %v554_v25 }
 0x171   : > { %v492_v27 = vpop.f32.mrf.mxu1 }
 0x172   : > { %v607_v30 = vmul.f32 %v590_v15, %v574_v10  ;;  %v631_v31 = vmul.f32 %v1124_v17, %v574_v10  ;;  %v583_v23 = vadd.f32 %v1475_v33, %v492_v27  ;;  %v595_v17 = vld [vmem:[%s1544_s19 + $0x38] sm:$0xff] }
 0x174   : > { %v616_v32 = vmul.f32 %v1125_v29, %v583_v23  ;;  %v640_v34 = vmul.f32 %v591_v28, %v583_v23  ;;  %v1569_v35 = vsub.f32 %v607_v30, %v615_v20  ;;  %v647_v37 = vadd.f32 %v639_v21, %v631_v31 }
 0x176   : > { %707 = vmatmul.f32.gmra.mxu3 %v1569_v35  ;;  %789 = vmatmul.f32.gmra.mxu0 %v647_v37 }
 0x177   : > { %830 = vmatmul.f32.gmra.mxu1 %v647_v37  ;;  %v557_v38 = vpop.f32.mrf.mxu2 }
 0x178   : > { %v575_v16 = vsub.f32 %v1451_v26, %v557_v38 }
 0x179   : > { %v495_v39 = vpop.f32.mrf.mxu1 }
 0x17a   : > { %v608_v42 = vmul.f32 %v591_v28, %v575_v16  ;;  %v632_v44 = vmul.f32 %v1125_v29, %v575_v16  ;;  %v584_v33 = vadd.f32 %v1503_v43, %v495_v39 }
 0x17c   : > { %v617_v45 = vmul.f32 %v1126_v41, %v584_v33  ;;  %v641_v47 = vmul.f32 %v592_v40, %v584_v33  ;;  %v624_v48 = vsub.f32 %v608_v42, %v616_v32  ;;  %v648_v49 = vadd.f32 %v640_v34, %v632_v44 }
 0x17e   : > { %710 = vmatmul.f32.gmra.mxu3 %v624_v48  ;;  %792 = vmatmul.f32.gmra.mxu0 %v648_v49 }
 0x17f   : > { %833 = vmatmul.f32.gmra.mxu1 %v648_v49  ;;  %v560_v50 = vpop.f32.mrf.mxu2 }
 0x180   : > { %v576_v56 = vsub.f32 %v1483_v36, %v560_v50 }
 0x181   : > { %v498_v26 = vpop.f32.mrf.mxu1 }
 0x182   : > { %v609_v59 = vmul.f32 %v592_v40, %v576_v56  ;;  %v633_v60 = vmul.f32 %v1126_v41, %v576_v56  ;;  %v585_v61 = vadd.f32 %v1526_v51, %v498_v26 }
 0x184   : > { %v618_v43 = vmul.f32 %v1127_v58, %v585_v61  ;;  %v642_v62 = vmul.f32 %v593_v57, %v585_v61  ;;  %v625_v63 = vsub.f32 %v609_v59, %v617_v45  ;;  %v649_v0 = vadd.f32 %v641_v47, %v633_v60 }
 0x186   : > { %713 = vmatmul.f32.gmra.mxu3 %v625_v63  ;;  %795 = vmatmul.f32.gmra.mxu0 %v649_v0 }
 0x187   : > { %836 = vmatmul.f32.gmra.mxu1 %v649_v0  ;;  %v563_v1 = vpop.f32.mrf.mxu2 }
 0x188   : > { %v577_v2 = vsub.f32 %v1511_v46, %v563_v1 }
 0x189   : > { %v501_v36 = vpop.f32.mrf.mxu1 }
 0x18a   : > { %v610_v5 = vmul.f32 %v593_v57, %v577_v2  ;;  %v634_v6 = vmul.f32 %v1127_v58, %v577_v2  ;;  %v586_v7 = vadd.f32 %v1534_v53, %v501_v36 }
 0x18c   : > { %v619_v51 = vmul.f32 %v1128_v4, %v586_v7  ;;  %v643_v11 = vmul.f32 %v594_v3, %v586_v7  ;;  %v626_v8 = vsub.f32 %v610_v5, %v618_v43  ;;  %v650_v12 = vadd.f32 %v642_v62, %v634_v6  ;;  %v866_v5 = vld [vmem:[%s1669_s5 + $0x8] sm:$0xff]  ;;  %v867_v7 = vld [vmem:[%s1669_s5 + $0x10] sm:$0xff] }
 0x18e   : > { %716 = vmatmul.f32.gmra.mxu3 %v626_v8  ;;  %798 = vmatmul.f32.gmra.mxu0 %v650_v12 }
 0x18f   : > { %839 = vmatmul.f32.gmra.mxu1 %v650_v12  ;;  %v566_v14 = vpop.f32.mrf.mxu2 }
 0x190   : > { %v578_v15 = vsub.f32 %v1529_v52, %v566_v14 }
 0x191   : > { %v504_v46 = vpop.f32.mrf.mxu1 }
 0x192   : > { %v611_v18 = vmul.f32 %v594_v3, %v578_v15  ;;  %v635_v19 = vmul.f32 %v1128_v4, %v578_v15  ;;  %v587_v20 = vadd.f32 %v1546_v55, %v504_v46  ;;  %v865_v3 = vld [vmem:[%s1669_s5] sm:$0xff]  ;;  %v868_v46 = vld [vmem:[%s1669_s5 + $0x18] sm:$0xff] }
 0x194   : > { %v620_v21 = vmul.f32 %v1129_v13, %v587_v20  ;;  %v644_v24 = vmul.f32 %v595_v17, %v587_v20  ;;  %v627_v53 = vsub.f32 %v611_v18, %v619_v51  ;;  %v651_v25 = vadd.f32 %v643_v11, %v635_v19  ;;  %v1138_v19 = vld [vmem:[%s1669_s5 + $0x40] sm:$0xff] }
 0x195   : > { %v869_v20 = vld [vmem:[%s1669_s5 + $0x20] sm:$0xff] }
 0x196   : > { %719 = vmatmul.f32.gmra.mxu3 %v627_v53  ;;  %801 = vmatmul.f32.gmra.mxu0 %v651_v25 }
 0x197   : > { %842 = vmatmul.f32.gmra.mxu1 %v651_v25  ;;  %v569_v10 = vpop.f32.mrf.mxu2  ;;  %v871_v25 = vld [vmem:[%s1669_s5 + $0x30] sm:$0xff] }
 0x198   : > { %v579_v27 = vsub.f32 %v1537_v54, %v569_v10  ;;  %v1141_v10 = vld [vmem:[%s1669_s5 + $0x58] sm:$0xff] }
 0x19a   : > { %v612_v28 = vmul.f32 %v595_v17, %v579_v27  ;;  %v636_v29 = vmul.f32 %v1129_v13, %v579_v27  ;;  %v872_v27 = vld [vmem:[%s1669_s5 + $0x38] sm:$0xff] }
 0x19c   : > { %v628_v52 = vsub.f32 %v612_v28, %v620_v21  ;;  %v652_v30 = vadd.f32 %v644_v24, %v636_v29  ;;  %v1139_v21 = vld [vmem:[%s1669_s5 + $0x48] sm:$0xff]  ;;  %v1142_v28 = vld [vmem:[%s1669_s5 + $0x60] sm:$0xff] }
 0x19d   : > { %v870_v24 = vld [vmem:[%s1669_s5 + $0x28] sm:$0xff] }
 0x19e   : > { %722 = vmatmul.f32.gmra.mxu3 %v628_v52  ;;  %804 = vmatmul.f32.gmra.mxu0 %v652_v30  ;;  %v1143_v29 = vld [vmem:[%s1669_s5 + $0x68] sm:$0xff] }
 0x19f   : > { %845 = vmatmul.f32.gmra.mxu1 %v652_v30  ;;  %v1145_v30 = vld [vmem:[%s1669_s5 + $0x78] sm:$0xff] }
 0x1a6   : > { %742 = vmatmul.f32.vlgmr.msrb.gmra.mxu3 %v1555_v9 }
 0x1ae   : > { %745 = vmatmul.f32.gmra.mxu3 %v1562_v22 }
 0x1b6   : > { %748 = vmatmul.f32.gmra.mxu3 %v1569_v35 }
 0x1be   : > { %751 = vmatmul.f32.gmra.mxu3 %v624_v48 }
 0x1c6   : > { %754 = vmatmul.f32.gmra.mxu3 %v625_v63 }
 0x1ce   : > { %757 = vmatmul.f32.gmra.mxu3 %v626_v8 }
 0x1d6   : > { %760 = vmatmul.f32.gmra.mxu3 %v627_v53  ;;  %v1140_v53 = vld [vmem:[%s1669_s5 + $0x50] sm:$0xff] }
 0x1de   : > { %763 = vmatmul.f32.gmra.mxu3 %v628_v52  ;;  %v1144_v52 = vld [vmem:[%s1669_s5 + $0x70] sm:$0xff] }
 0x1e3   : > { %v784_v42 = vpop.f32.mrf.mxu0 }
 0x1e4   : > { %v825_v55 = vpop.f32.mrf.mxu1 }
 0x1e9   : > { %v702_v54 = vpop.f32.mrf.mxu3 }
 0x1ea   : > { %v849_v31 = vsub.f32 %v702_v54, %v825_v55 }
 0x1eb   : > { %v787_v48 = vpop.f32.mrf.mxu0 }
 0x1ec   : > { %v828_v23 = vpop.f32.mrf.mxu1 }
 0x1f1   : > { %v705_v32 = vpop.f32.mrf.mxu3 }
 0x1f2   : > { %v850_v59 = vsub.f32 %v705_v32, %v828_v23 }
 0x1f3   : > { %v790_v60 = vpop.f32.mrf.mxu0 }
 0x1f4   : > { %v831_v34 = vpop.f32.mrf.mxu1 }
 0x1f9   : > { %v708_v37 = vpop.f32.mrf.mxu3 }
 0x1fa   : > { %v851_v58 = vsub.f32 %v708_v37, %v831_v34 }
 0x1fb   : > { %v793_v43 = vpop.f32.mrf.mxu0 }
 0x1fc   : > { %v834_v38 = vpop.f32.mrf.mxu1 }
 0x201   : > { %v711_v16 = vpop.f32.mrf.mxu3 }
 0x202   : > { %v852_v26 = vsub.f32 %v711_v16, %v834_v38 }
 0x203   : > { %v796_v0 = vpop.f32.mrf.mxu0 }
 0x204   : > { %v837_v39 = vpop.f32.mrf.mxu1 }
 0x209   : > { %v714_v9 = vpop.f32.mrf.mxu3 }
 0x20a   : > { %v853_v50 = vsub.f32 %v714_v9, %v837_v39 }
 0x20b   : > { %v799_v2 = vpop.f32.mrf.mxu0 }
 0x20c   : > { %v840_v40 = vpop.f32.mrf.mxu1 }
 0x211   : > { %v717_v22 = vpop.f32.mrf.mxu3 }
 0x212   : > { %v854_v49 = vsub.f32 %v717_v22, %v840_v40 }
 0x213   : > { %v802_v4 = vpop.f32.mrf.mxu0 }
 0x214   : > { %v843_v41 = vpop.f32.mrf.mxu1 }
 0x219   : > { %v720_v35 = vpop.f32.mrf.mxu3 }
 0x21a   : > { %v855_v47 = vsub.f32 %v720_v35, %v843_v41 }
 0x21b   : > { %v805_v51 = vpop.f32.mrf.mxu0 }
 0x21c   : > { %v846_v44 = vpop.f32.mrf.mxu1 }
 0x221   : > { %v723_v33 = vpop.f32.mrf.mxu3 }
 0x222   : > { %v856_v45 = vsub.f32 %v723_v33, %v846_v44 }
 0x224   : > { %905 = vmatpush.msrb.mxu2 %v856_v45 }
 0x226   : > { %906 = vmatpush.msrb.mxu2 %v855_v47 }
 0x228   : > { %907 = vmatpush.msrb.mxu2 %v854_v49 }
 0x229   : > { %v743_v56 = vpop.f32.mrf.mxu3 }
 0x22a   : > { %v857_v57 = vadd.f32 %v784_v42, %v743_v56  ;;  %908 = vmatpush.msrb.mxu2 %v853_v50 }
 0x22c   : > { %909 = vmatpush.msrb.mxu2 %v852_v26 }
 0x22e   : > { %910 = vmatpush.msrb.mxu2 %v851_v58 }
 0x230   : > { %911 = vmatpush.msrb.mxu2 %v850_v59 }
 0x231   : > { %v746_v61 = vpop.f32.mrf.mxu3 }
 0x232   : > { %912 = vmatpush.msrb.mxu2 %v849_v31  ;;  %v858_v18 = vadd.f32 %v787_v48, %v746_v61 }
 0x233   : > { %1130 = vmatmul.msk.f32.vlgmr.msrb.gmra.mxu2 %vm296_vm0, %v865_v3 }
 0x239   : > { %v749_v62 = vpop.f32.mrf.mxu3 }
 0x23a   : > { %v859_v13 = vadd.f32 %v790_v60, %v749_v62 }
 0x23b   : > { %1131 = vmatmul.msk.f32.gmra.mxu2 %vm296_vm0, %v866_v5 }
 0x241   : > { %v752_v63 = vpop.f32.mrf.mxu3 }
 0x242   : > { %v860_v17 = vadd.f32 %v793_v43, %v752_v63 }
 0x243   : > { %1132 = vmatmul.msk.f32.gmra.mxu2 %vm296_vm0, %v867_v7 }
 0x249   : > { %v755_v1 = vpop.f32.mrf.mxu3 }
 0x24a   : > { %v861_v15 = vadd.f32 %v796_v0, %v755_v1 }
 0x24b   : > { %1133 = vmatmul.msk.f32.gmra.mxu2 %vm296_vm0, %v868_v46 }
 0x251   : > { %v758_v36 = vpop.f32.mrf.mxu3 }
 0x252   : > { %v862_v14 = vadd.f32 %v799_v2, %v758_v36 }
 0x253   : > { %1134 = vmatmul.msk.f32.gmra.mxu2 %vm296_vm0, %v869_v20 }
 0x259   : > { %v761_v6 = vpop.f32.mrf.mxu3 }
 0x25a   : > { %v863_v12 = vadd.f32 %v802_v4, %v761_v6 }
 0x25b   : > { %1135 = vmatmul.msk.f32.gmra.mxu2 %vm296_vm0, %v870_v24 }
 0x261   : > { %v764_v11 = vpop.f32.mrf.mxu3 }
 0x262   : > { %v864_v8 = vadd.f32 %v805_v51, %v764_v11 }
 0x263   : > { %1136 = vmatmul.msk.f32.gmra.mxu2 %vm296_vm0, %v871_v25 }
 0x264   : > { %979 = vmatpush.msra.mxu3 %v864_v8 }
 0x266   : > { %980 = vmatpush.msra.mxu3 %v863_v12 }
 0x268   : > { %981 = vmatpush.msra.mxu3 %v862_v14 }
 0x26a   : > { %982 = vmatpush.msra.mxu3 %v861_v15 }
 0x26b   : > { %1137 = vmatmul.msk.f32.gmra.mxu2 %vm296_vm0, %v872_v27 }
 0x26c   : > { %983 = vmatpush.msra.mxu3 %v860_v17 }
 0x26e   : > { %984 = vmatpush.msra.mxu3 %v859_v13 }
 0x270   : > { %985 = vmatpush.msra.mxu3 %v858_v18 }
 0x272   : > { %986 = vmatpush.msra.mxu3 %v857_v57 }
 0x273   : > { %1146 = vmatmul.msk.f32.vlgmr.msra.gmra.mxu3 %vm296_vm0, %v1138_v19 }
 0x27b   : > { %1147 = vmatmul.msk.f32.gmra.mxu3 %vm296_vm0, %v1139_v21 }
 0x283   : > { %1148 = vmatmul.msk.f32.gmra.mxu3 %vm296_vm0, %v1140_v53 }
 0x28b   : > { %1149 = vmatmul.msk.f32.gmra.mxu3 %vm296_vm0, %v1141_v10 }
 0x293   : > { %1150 = vmatmul.msk.f32.gmra.mxu3 %vm296_vm0, %v1142_v28 }
 0x29b   : > { %1151 = vmatmul.msk.f32.gmra.mxu3 %vm296_vm0, %v1143_v29 }
 0x2a3   : > { %1152 = vmatmul.msk.f32.gmra.mxu3 %vm296_vm0, %v1144_v52 }
 0x2ab   : > { %1153 = vmatmul.msk.f32.gmra.mxu3 %vm296_vm0, %v1145_v30 }
 0x2b6   : > { %v914_v55 = vpop.f32.mrf.mxu2 }
 0x2be   : > { %v917_v54 = vpop.f32.mrf.mxu2 }
 0x2c6   : > { %v920_v32 = vpop.f32.mrf.mxu2 }
 0x2ce   : > { %v923_v38 = vpop.f32.mrf.mxu2 }
 0x2d6   : > { %v926_v40 = vpop.f32.mrf.mxu2 }
 0x2de   : > { %v929_v42 = vpop.f32.mrf.mxu2 }
 0x2e6   : > { %v932_v45 = vpop.f32.mrf.mxu2 }
 0x2ee   : > { %v935_v49 = vpop.f32.mrf.mxu2 }
 0x2f6   : > { %v988_v31 = vpop.f32.mrf.mxu3 }
 0x2f7   : > { %v1012_v23 = vsub.f32 %v914_v55, %v988_v31 }
 0x2f9   : > { %1020 = vst [vmem:[%s271_s12] sm:$0xff] %v1012_v23 }
 0x2fe   : > { %v991_v34 = vpop.f32.mrf.mxu3 }
 0x2ff   : > { %v1013_v37 = vsub.f32 %v917_v54, %v991_v34 }
 0x301   : > { %1021 = vst [vmem:[%s271_s12 + $0x8] sm:$0xff] %v1013_v37 }
 0x306   : > { %v994_v16 = vpop.f32.mrf.mxu3 }
 0x307   : > { %v1014_v39 = vsub.f32 %v920_v32, %v994_v16 }
 0x309   : > { %1022 = vst [vmem:[%s271_s12 + $0x10] sm:$0xff] %v1014_v39 }
 0x30e   : > { %v997_v9 = vpop.f32.mrf.mxu3 }
 0x30f   : > { %v1015_v22 = vsub.f32 %v923_v38, %v997_v9 }
 0x311   : > { %1023 = vst [vmem:[%s271_s12 + $0x18] sm:$0xff] %v1015_v22 }
 0x316   : > { %v1000_v41 = vpop.f32.mrf.mxu3 }
 0x317   : > { %v1016_v35 = vsub.f32 %v926_v40, %v1000_v41 }
 0x319   : > { %1024 = vst [vmem:[%s271_s12 + $0x20] sm:$0xff] %v1016_v35 }
 0x31e   : > { %v1003_v44 = vpop.f32.mrf.mxu3 }
 0x31f   : > { %v1017_v33 = vsub.f32 %v929_v42, %v1003_v44 }
 0x321   : > { %1025 = vst [vmem:[%s271_s12 + $0x28] sm:$0xff] %v1017_v33 }
 0x326   : > { %v1006_v47 = vpop.f32.mrf.mxu3 }
 0x327   : > { %v1018_v48 = vsub.f32 %v932_v45, %v1006_v47 }
 0x329   : > { %1026 = vst [vmem:[%s271_s12 + $0x30] sm:$0xff] %v1018_v48 }
 0x32e   : > { %v1009_v50 = vpop.f32.mrf.mxu3 }
 0x32f   : > { %v1019_v56 = vsub.f32 %v935_v49, %v1009_v50 }
 0x331   : > { %1027 = vst [vmem:[%s271_s12 + $0x38] sm:$0xff] %v1019_v56 }
 0x332 PF: > { %s16_s21 = sadd.s32 1, %s1173_s21  }
 0x333   : > { %p13_p4 = scmp.ge.s32.totalorder %s16_s21, 6  }
 0x335   :  { %15 = sbr.rel (!%p13_p4) target bundleno = 1 (0x1), region = 79 }

</bundles_post_ra>
